<compile_context>
chip_gen: v6e
topology: v6e:2x2x1
jax: 0.10.0
libtpu: 0.0.40
codegen_flags: <defaults>
</compile_context>

<pallas_src>
import functools

import jax
import jax.numpy as jnp
from jax.experimental import pallas as pl
from jax.experimental.pallas import tpu as pltpu


def _ce_label_smooth_kernel(logits_ref, targets_ref, out_ref, *,
                            epsilon, num_classes, true_batch,
                            block_b, tiles_per_split, needs_mask):
    # logits_ref: (TB, K) native dtype; targets_ref: (TB, 1) int32;
    # out_ref: (8, 128) f32 per-split accumulator tile, VMEM-resident across the
    # "arbitrary" batch-tile axis (index_map constant in i).
    i = pl.program_id(1)

    @pl.when(i == 0)
    def _init():
        out_ref[...] = jnp.zeros_like(out_ref)

    x = logits_ref[...].astype(jnp.float32)            # (TB, K) f32
    tb, k = x.shape
    tgt = targets_ref[...]                              # (TB, 1) int32

    # Numerically-stable log-sum-exp over the class (lane) axis.
    m = jnp.max(x, axis=1, keepdims=True)               # (TB, 1)
    lse = m + jnp.log(jnp.sum(jnp.exp(x - m), axis=1, keepdims=True))

    # Fused smoothed-target weighted reduction: w = eps/K + (1-eps)*onehot.
    uniform = jnp.float32(epsilon / float(num_classes))
    class_ids = jax.lax.broadcasted_iota(jnp.int32, (tb, k), 1)
    w = jnp.where(class_ids == tgt, jnp.float32(1.0 - epsilon) + uniform, uniform)
    row_loss = lse - jnp.sum(w * x, axis=1, keepdims=True)          # (TB, 1)

    if needs_mask:
        # Mask rows of the ragged last tile / duplicated clamped tiles using the
        # LOGICAL tile index (so a clamped duplicate never double-counts real rows).
        t = pl.program_id(0) * tiles_per_split + i
        row_ids = t * block_b + jax.lax.broadcasted_iota(jnp.int32, (tb, 1), 0)
        row_loss = jnp.where(row_ids < true_batch, row_loss, 0.0)

    # Scalar partial sum broadcast into the lane-dense accumulator tile.
    out_ref[...] += jnp.sum(row_loss)

    @pl.when(i == pl.num_programs(1) - 1)
    def _finalize():
        out_ref[...] = out_ref[...] / jnp.float32(true_batch)


def _round_up(x, m):
    return (x + m - 1) // m * m


def cross_entropy_label_smooth(logits, targets, epsilon=0.1, block_b=None,
                               num_splits=None):
    """logits: (B, K) float (f32/bf16); targets: (B,) int labels. Returns scalar f32."""
    b, k = logits.shape
    itemsize = jnp.dtype(logits.dtype).itemsize

    # Physical VMEM (per TensorCore); conservative v7x fallback if the query fails.
    phys_vmem = 64 << 20
    try:
        info = pltpu.get_tpu_info()
        phys_vmem = int(getattr(info, "vmem_capacity_bytes", phys_vmem)) or phys_vmem
    except Exception:
        pass

    # Per-row VMEM cost: double-buffered native-dtype logits row, ~5 f32/i32 (row, K)
    # temporaries (x, class_ids, w, exp(x-m), w*x; XLA fuses some), and the lane-padded
    # (row, 1) -> (row, 128) int32 target buffers (double-buffered).
    n_wide_tmp = 5
    per_row = 2 * k * itemsize + n_wide_tmp * k * 4 + 2 * 128 * 4

    if block_b is None:
        budget = int(phys_vmem * 0.6)
        block_b = budget // per_row
    block_b = max(8, (int(block_b) // 8) * 8)
    block_b = min(block_b, 4096)
    if b >= 8:
        block_b = min(block_b, (b // 8) * 8)   # keep every block start inside the array
    else:
        block_b = b                            # block == full (sub-8-row) batch dim

    total_tiles = -(-b // block_b)
    if num_splits is None:
        # 2-way split feeds both v7x TensorCores via the "parallel" axis; on 1-TC chips
        # it just runs serially (only cost: one extra 4 KiB accumulator tile).
        num_splits = 2 if total_tiles >= 2 else 1
    num_splits = max(1, min(int(num_splits), total_tiles))
    tiles_per_split = -(-total_tiles // num_splits)

    needs_mask = (b % block_b != 0) or (num_splits * tiles_per_split != total_tiles)

    if num_splits * tiles_per_split == total_tiles:
        def data_map(c, i):
            return (c * tiles_per_split + i, 0)
    else:
        last_tile = total_tiles - 1

        def data_map(c, i):
            # Clamp the trailing duplicate tile onto the last real tile; its rows are
            # masked out in-kernel via the logical row index.
            return (jnp.minimum(c * tiles_per_split + i, last_tile), 0)

    targets_2d = targets.astype(jnp.int32).reshape(b, 1)

    # Scoped-VMEM budget from the chosen tile (inputs double-buffered, targets
    # lane-padded to 128, wide f32/i32 temporaries, per-split output tiles).
    in_tile = block_b * k * itemsize
    wide_tile = block_b * k * 4
    tgt_tile = block_b * 128 * 4
    required = (2 * in_tile + 2 * tgt_tile + n_wide_tmp * wide_tile
                + 2 * 8 * 128 * 4 + (2 << 20))
    vmem_limit = int(min(max(required, 8 << 20), int(phys_vmem * 0.8)))

    kernel = functools.partial(
        _ce_label_smooth_kernel,
        epsilon=float(epsilon), num_classes=k, true_batch=b,
        block_b=block_b, tiles_per_split=tiles_per_split, needs_mask=needs_mask)

    cost = pl.CostEstimate(
        flops=int(6 * b * k),
        transcendentals=int(b * k),
        bytes_accessed=int(b * k * itemsize + b * 4 + num_splits * 8 * 128 * 4))

    out = pl.pallas_call(
        kernel,
        out_shape=jax.ShapeDtypeStruct((num_splits * 8, 128), jnp.float32),
        grid=(num_splits, tiles_per_split),
        in_specs=[
            pl.BlockSpec((block_b, k), data_map),   # logits tile (full K on the lane axis)
            pl.BlockSpec((block_b, 1), data_map),   # int32 labels (lane-padded in VMEM)
        ],
        out_specs=pl.BlockSpec((8, 128), lambda c, i: (c, 0)),  # per-split resident acc
        compiler_params=pltpu.CompilerParams(
            dimension_semantics=("parallel", "arbitrary"),
            vmem_limit_bytes=vmem_limit,
        ),
        cost_estimate=cost,
    )(logits, targets_2d)

    # Each split's partial is already divided by the true B -> just sum them.
    partials = out.reshape(num_splits, 8, 128)[:, 0, 0]
    return jnp.sum(partials)


def _reference(logits, targets, epsilon=0.1):
    # Pure-JAX reference mirroring the PyTorch module.
    log_probs = jax.nn.log_softmax(logits.astype(jnp.float32), axis=1)
    k = logits.shape[1]
    onehot = jax.nn.one_hot(targets, k, dtype=jnp.float32)
    smooth = (1.0 - epsilon) * onehot + epsilon / k
    return jnp.sum(jnp.mean(-smooth * log_probs, axis=0))


if __name__ == "__main__":
    key = jax.random.PRNGKey(0)
    k_logits, k_targets = jax.random.split(key)

    batch, num_classes = 20, 32
    logits = jax.random.normal(k_logits, (batch, num_classes), dtype=jnp.float32)
    targets = jax.random.randint(k_targets, (batch,), 0, num_classes, dtype=jnp.int32)

    # Config 1: small forced tile -> 3 batch tiles over a 2-way split (exercises the
    # parallel axis, the clamped duplicate tile and the ragged-tail row mask).
    loss = cross_entropy_label_smooth(logits, targets, epsilon=0.1, block_b=8)
    loss = jax.block_until_ready(loss)
    ref = _reference(logits, targets, epsilon=0.1)
    assert jnp.allclose(loss, ref, rtol=1e-5, atol=1e-5), (loss, ref)

    # Config 2: auto-tiled bf16 path (native-dtype DMA, f32 math inside the kernel,
    # no wrapper-side padding, ragged last tile masked in-kernel).
    logits_bf16 = logits.astype(jnp.bfloat16)
    loss_bf16 = cross_entropy_label_smooth(logits_bf16, targets, epsilon=0.1)
    loss_bf16 = jax.block_until_ready(loss_bf16)
    ref_bf16 = _reference(logits_bf16, targets, epsilon=0.1)
    assert jnp.allclose(loss_bf16, ref_bf16, rtol=1e-4, atol=1e-4), (loss_bf16, ref_bf16)

    print("KERNEL_OK")
</pallas_src>

<mosaic_0001>
module attributes {stable_mosaic.version = 11 : i64} {
  func.func @_ce_label_smooth_kernel(%arg0: i32, %arg1: i32, %arg2: memref<8x32xf32, #tpu.memory_space<vmem>>, %arg3: memref<8x1xi32, #tpu.memory_space<vmem>>, %arg4: memref<8x128xf32, #tpu.memory_space<vmem>>) attributes {dimension_semantics = [#tpu.dimension_semantics<parallel>, #tpu.dimension_semantics<arbitrary>], iteration_bounds = array<i64: 2, 2>, scalar_prefetch = 0 : i64, scratch_operands = 0 : i64, tpu.core_type = #tpu.core_type<tc>, window_params = [{transform_indices = @transform_0, window_bounds = array<i64: 8, 32>}, {transform_indices = @transform_1, window_bounds = array<i64: 8, 1>}, {transform_indices = @transform_2, window_bounds = array<i64: 8, 128>}]} {
    %c0_i32 = arith.constant 0 : i32
    %0 = arith.cmpi eq, %arg1, %c0_i32 : i32
    %1 = arith.extui %0 : i1 to i32
    %c0_i32_0 = arith.constant 0 : i32
    %2 = arith.cmpi ne, %1, %c0_i32_0 : i32
    scf.if %2 {
      %cst_16 = arith.constant 0.000000e+00 : f32
      %46 = vector.broadcast %cst_16 : f32 to vector<8x128xf32>
      %c0_17 = arith.constant 0 : index
      %c0_18 = arith.constant 0 : index
      %47 = vector.load %arg4[%c0_17, %c0_18] : memref<8x128xf32, #tpu.memory_space<vmem>>, vector<8x128xf32>
      tpu.vector_store %arg4[%c0_17, %c0_18], %46 {strides = array<i32>} : memref<8x128xf32, #tpu.memory_space<vmem>>, vector<8x128xf32>,
    } else {
    }
    %c0 = arith.constant 0 : index
    %c0_1 = arith.constant 0 : index
    %3 = vector.load %arg2[%c0, %c0_1] : memref<8x32xf32, #tpu.memory_space<vmem>>, vector<8x32xf32>
    %c0_2 = arith.constant 0 : index
    %c0_3 = arith.constant 0 : index
    %4 = vector.load %arg3[%c0_2, %c0_3] : memref<8x1xi32, #tpu.memory_space<vmem>>, vector<8x1xi32>
    %cst = arith.constant dense<0xFF800000> : vector<8xf32>
    %5 = vector.multi_reduction <maximumf>, %3, %cst [1] : vector<8x32xf32> to vector<8xf32>
    %6 = vector.shape_cast %5 : vector<8xf32> to vector<8x1xf32>
    %7 = vector.broadcast %6 : vector<8x1xf32> to vector<8x32xf32>
    %8 = arith.subf %3, %7 : vector<8x32xf32>
    %9 = math.exp %8 : vector<8x32xf32>
    %cst_4 = arith.constant dense<0.000000e+00> : vector<8xf32>
    %10 = vector.multi_reduction <add>, %9, %cst_4 [1] : vector<8x32xf32> to vector<8xf32>
    %11 = vector.shape_cast %10 : vector<8xf32> to vector<8x1xf32>
    %12 = math.log %11 : vector<8x1xf32>
    %13 = arith.addf %6, %12 : vector<8x1xf32>
    %14 = tpu.iota {dimensions = array<i32: 1>} : vector<8x32xi32>
    %15 = vector.broadcast %4 : vector<8x1xi32> to vector<8x32xi32>
    %16 = arith.cmpi eq, %14, %15 : vector<8x32xi32>
    %cst_5 = arith.constant 0.899999976 : f32
    %cst_6 = arith.constant 3.125000e-03 : f32
    %17 = arith.addf %cst_5, %cst_6 : f32
    %cst_7 = arith.constant 3.125000e-03 : f32
    %18 = vector.broadcast %17 : f32 to vector<8x32xf32>
    %19 = vector.broadcast %cst_7 : f32 to vector<8x32xf32>
    %20 = arith.select %16, %18, %19 : vector<8x32xi1>, vector<8x32xf32>
    %21 = arith.mulf %20, %3 : vector<8x32xf32>
    %cst_8 = arith.constant dense<0.000000e+00> : vector<8xf32>
    %22 = vector.multi_reduction <add>, %21, %cst_8 [1] : vector<8x32xf32> to vector<8xf32>
    %23 = vector.shape_cast %22 : vector<8xf32> to vector<8x1xf32>
    %24 = arith.subf %13, %23 : vector<8x1xf32>
    %c2_i32 = arith.constant 2 : i32
    %25 = arith.muli %arg0, %c2_i32 : i32
    %26 = arith.addi %25, %arg1 : i32
    %c8_i32 = arith.constant 8 : i32
    %27 = arith.muli %26, %c8_i32 : i32
    %28 = tpu.iota {dimensions = array<i32: 0>} : vector<8x1xi32>
    %29 = vector.broadcast %27 : i32 to vector<8x1xi32>
    %30 = arith.addi %29, %28 : vector<8x1xi32>
    %c20_i32 = arith.constant 20 : i32
    %31 = vector.broadcast %c20_i32 : i32 to vector<8x1xi32>
    %32 = arith.cmpi slt, %30, %31 : vector<8x1xi32>
    %cst_9 = arith.constant 0.000000e+00 : f32
    %33 = vector.broadcast %cst_9 : f32 to vector<8x1xf32>
    %34 = arith.select %32, %24, %33 : vector<8x1xi1>, vector<8x1xf32>
    %c0_10 = arith.constant 0 : index
    %c0_11 = arith.constant 0 : index
    %35 = vector.load %arg4[%c0_10, %c0_11] : memref<8x128xf32, #tpu.memory_space<vmem>>, vector<8x128xf32>
    %36 = vector.shape_cast %34 : vector<8x1xf32> to vector<1x8x1xf32>
    %cst_12 = arith.constant dense<0.000000e+00> : vector<1xf32>
    %37 = vector.multi_reduction <add>, %36, %cst_12 [1, 2] : vector<1x8x1xf32> to vector<1xf32>
    %38 = vector.shape_cast %37 : vector<1xf32> to vector<1x1x1xf32>
    %39 = vector.extract %38[0, 0, 0] : f32 from vector<1x1x1xf32>
    %40 = vector.broadcast %39 : f32 to vector<8x128xf32>
    %41 = arith.addf %35, %40 : vector<8x128xf32>
    %c0_13 = arith.constant 0 : index
    %c0_14 = arith.constant 0 : index
    %42 = vector.load %arg4[%c0_13, %c0_14] : memref<8x128xf32, #tpu.memory_space<vmem>>, vector<8x128xf32>
    tpu.vector_store %arg4[%c0_13, %c0_14], %41 {strides = array<i32>} : memref<8x128xf32, #tpu.memory_space<vmem>>, vector<8x128xf32>,
    %c1_i32 = arith.constant 1 : i32
    %43 = arith.cmpi eq, %arg1, %c1_i32 : i32
    %44 = arith.extui %43 : i1 to i32
    %c0_i32_15 = arith.constant 0 : i32
    %45 = arith.cmpi ne, %44, %c0_i32_15 : i32
    scf.if %45 {
      %c0_16 = arith.constant 0 : index
      %c0_17 = arith.constant 0 : index
      %46 = vector.load %arg4[%c0_16, %c0_17] : memref<8x128xf32, #tpu.memory_space<vmem>>, vector<8x128xf32>
      %cst_18 = arith.constant 2.000000e+01 : f32
      %47 = vector.broadcast %cst_18 : f32 to vector<8x128xf32>
      %48 = arith.divf %46, %47 : vector<8x128xf32>
      %c0_19 = arith.constant 0 : index
      %c0_20 = arith.constant 0 : index
      %49 = vector.load %arg4[%c0_19, %c0_20] : memref<8x128xf32, #tpu.memory_space<vmem>>, vector<8x128xf32>
      tpu.vector_store %arg4[%c0_19, %c0_20], %48 {strides = array<i32>} : memref<8x128xf32, #tpu.memory_space<vmem>>, vector<8x128xf32>,
    } else {
    }
    return
  }
  func.func @transform_0(%arg0: i32, %arg1: i32) -> (i32, i32) {
    %c2_i32 = arith.constant 2 : i32
    %0 = arith.muli %arg0, %c2_i32 : i32
    %1 = arith.addi %0, %arg1 : i32
    %c2_i32_0 = arith.constant 2 : i32
    %2 = arith.minsi %1, %c2_i32_0 : i32
    %c0_i32 = arith.constant 0 : i32
    %c0_i32_1 = arith.constant 0 : i32
    return %2, %c0_i32 : i32, i32
  }
  func.func @transform_1(%arg0: i32, %arg1: i32) -> (i32, i32) {
    %c2_i32 = arith.constant 2 : i32
    %0 = arith.muli %arg0, %c2_i32 : i32
    %1 = arith.addi %0, %arg1 : i32
    %c2_i32_0 = arith.constant 2 : i32
    %2 = arith.minsi %1, %c2_i32_0 : i32
    %c0_i32 = arith.constant 0 : i32
    %c0_i32_1 = arith.constant 0 : i32
    return %2, %c0_i32 : i32, i32
  }
  func.func @transform_2(%arg0: i32, %arg1: i32) -> (i32, i32) {
    %c0_i32 = arith.constant 0 : i32
    %c0_i32_0 = arith.constant 0 : i32
    return %arg0, %c0_i32 : i32, i32
  }
}

</mosaic_0001>

<bundles_post_ra>
// kernel: tpu_custom_call.1
= control target key start
LH: loop header
LB: loop body
LE: loop exit
PB: predicated region body
PF: predicated region fallthrough
CT: control target
= control target key end

     0   :  { %7 = vsyncpa [#allocation3], 0  ;;  %s750_s0 = inlined_call_operand.vmem [shape: f32[20,32], index: 0, kind: input, shape index: {}]   ;;  %s751_s1 = inlined_call_operand.vmem [shape: s32[20,1], index: 1, kind: input, shape index: {}]   ;;  %s752_s2 = inlined_call_operand.hbm [shape: f32[16,128], index: 2, kind: output, shape index: {}]  }
   0x1   :  { %9 = vsyncpa [#allocation3 + $0x1], 0  ;;  %s606_s9 = smov 0   ;;  %s608_s10 = smov 0  }
   0x2   :  { %s610_s11 = smov 0   ;;  %s612_s12 = smov 0  }
   0x3   :  { %s614_s13 = smov 0   ;;  %s616_s14 = smov 0  }
   0x4   :  { %s618_s15 = smov 0   ;;  %s620_s16 = smov 0  }
   0x5 LB: > { %s384_s17 = sadd.s32 4294967295, %s585_s16   ;;  %s385_s18 = sadd.s32 4294967294, %s585_s16   ;;  %s585_s16 = sphi %s620_s16, %s15_s16   ;;  %s581_s15 = sphi %s618_s15, %s761_s15   ;;  %s577_s14 = sphi %s616_s14, %s760_s14   ;;  %s573_s13 = sphi %s614_s13, %s759_s13   ;;  %s569_s12 = sphi %s612_s12, %s758_s12   ;;  %s565_s11 = sphi %s610_s11, %s757_s11   ;;  %s561_s10 = sphi %s608_s10, %s756_s10   ;;  %s557_s9 = sphi %s606_s9, %s755_s9  }
   0x6   : > { %s24_s19 = sadd.s32 1, %s577_s14  ;;  %s27_s20 = sadd.s32 1, %s581_s15 }
   0x7   : > { %p25_p0 = scmp.ge.s32.totalorder %s24_s19, 2  ;;  %p112_p1 = scmp.ne.s32.totalorder %s565_s11, %s561_s10 }
   0x8   : > { %p113_p2 = scmp.eq.s32.totalorder %s384_s17, 3  ;;  %p118_p4 = scmp.ne.s32.totalorder %s561_s10, %s557_s9 }
   0x9   : > { %s763_s19 = smov (%p25_p0, %s24_s19), 0  ;;  %s765_s20 = smov (!%p25_p0, %s27_s20), %s581_s15 }
   0xa   : > { %p655_p3 = por %p113_p2, %p112_p1  ;;  %p29_p5 = scmp.ge.s32.totalorder %s765_s20, 2 }
   0xb   : > { %p119_p6 = scmp.eq.s32.totalorder %s385_s18, 3  ;;  %p392_p7 = scmp.ge.s32.totalorder %s585_s16, 1 }
   0xc   : > { %p167_p8 = scmp.lt.s32.totalorder %s585_s16, 5  ;;  %s767_s20 = smov (%p29_p5, %s765_s20), 0 }
   0xd   : > { %p665_p9 = por %p119_p6, %p118_p4  ;;  %s99_s23 = ssub.s32 %s581_s15, %s767_s20 }
   0xe   : > { %p168_p10 = pnand %p392_p7, %p167_p8  ;;  %s102_s24 = sadd.s32 1, %s565_s11 }
   0xf   : > { %p100_p11 = scmp.eq.s32.totalorder %s99_s23, 0  ;;  %s197_s26 = sand.u32 (!%p168_p10), 1, %s561_s10  }
  0x10   : > { %171 = sbr.rel (%p168_p10) target bundleno = 585 (0x249), region = 28  ;;  %s394_s27 = sshll.u32 (!%p168_p10), %s573_s13, 1 }
  0x11   : > { %s673_s25 = scalar_select %p100_p11, %s565_s11, %s102_s24  }
  0x12   : > { %s393_s28 = sshll.u32 (!%p168_p10), %s197_s26, 3  ;;  %s680_s29 = sadd.s32 (!%p168_p10), %s569_s12, %s394_s27 }
  0x13   : > { %p202_p12 = scmp.lt.s32.totalorder (!%p168_p10), %s680_s29, 2  ;;  %s690_s18 = scalar_lea.vmem (!%p168_p10), [#allocation2], %s393_s28 }
  0x14   : > { %p404_p13 = scmp.ne.s32.totalorder (!%p168_p10), %s569_s12, 0 }
  0x15   : > { %s203_s30 = scalar_select %p202_p12, %s680_s29, 2 }
  0x16   : > { %227 = sbr.rel (%p404_p13) target bundleno = 29 (0x1d), region = 32 }
  0x17   : > { %s769_s30 = smov (!%p202_p12, %s203_s30), 2 }
  0x18   : > { %s398_s3 = sshll.u32 %s769_s30, 3 }
  0x19   : > { %s207_s6 = scalar_lea.vmem %s750_s0, %s398_s3  ;;  %s219_s17 = scalar_lea.vmem %s751_s1, %s398_s3 }
  0x1b   : > { %v587_v0 = vmov 0.0  }
  0x1c   : > { %228 = vst [vmem:[%s690_s18] sm:$0xff] %v587_v0 }
  0x1d PF: > { %v229_v1 = vld [vmem:[%s207_s6] sm:$0xff]  ;;  %vm231_vm0 = vcmask 261120   ;;  %v588_v3 = vmov 0   ;;  %v244_v8 = vlaneseq  ;;  %v589_v11 = vmov 0.003125   ;;  %s406_s23 = sshll.u32 %s680_s29, 3 }
  0x1e   : > { %v232_v2 = vsel %vm231_vm0, %v229_v1, -inf  ;;  %488 = vset.pattern.permute.xlu0 %v588_v3  ;;  %v230_v4 = vld [vmem:[%s219_s17] sm:$0xff]  ;;  %v261_v19 = vstv %s406_s23  ;;  %vm266_vm3 = vcmask 7168   ;;  %p407_p0 = scmp.ne.s32.totalorder %s569_s12, 1 }
  0x1f   : > { %233 = vmax.xlane.f32.xlu0 %v232_v2  ;;  %v245_v9 = vand.u32 127, %v244_v8  ;;  %v260_v18 = vshrl.u32 %v244_v8, 7 }
  0x21   : > { %v262_v21 = vadd.s32 %v261_v19, %v260_v18 }
  0x23   : > { %vm263_vm2 = vcmp.lt.s32.totalorder %v262_v21, 20  ;;  %v265_v35 = vld [vmem:[%s690_s18] sm:$0xff] }
  0x35   : > { %247 = vperm.xlu0 %488, %v230_v4  }
  0xa8   : > { %v234_v5 = vpop.xlane.xlu0 %233 }
  0xa9   : > { %v235_v6 = vsub.f32 %v229_v1, %v234_v5 }
  0xab   : > { %v236_v7 = vmul.f32 1.442695, %v235_v6 }
  0xad   : > { %489 = vpow2.f32 %v236_v7 }
  0xb0   : > { %v248_v10 = vpop.permute.xlu0 %247 }
  0xb1   : > { %vm249_vm1 = vcmp.eq.s32.totalorder %v245_v9, %v248_v10 }
  0xb2   : > { %v250_v12 = vsel %vm249_vm1, 0.903125, %v589_v11 }
  0xb3   : > { %v251_v13 = vmul.f32 %v250_v12, %v229_v1 }
  0xb5   : > { %v252_v16 = vsel %vm231_vm0, %v251_v13, 0.0 }
  0xba   : > { %v490_v14 = vpop.eup %489 }
  0xbb   : > { %v238_v15 = vsel %vm231_vm0, %v490_v14, 0.0 }
  0xbc   : > { %239 = vadd.xlane.f32.xlu1 %v238_v15 }
  0xc0   : > { %253 = vadd.xlane.f32.xlu1 %v252_v16 }
 0x145   : > { %v240_v17 = vpop.xlane.xlu1 %239 }
 0x146   : > { %491 = vlog2.f32 %v240_v17 }
 0x149   : > { %v254_v23 = vpop.xlane.xlu1 %253 }
 0x153   : > { %v492_v20 = vpop.eup %491 }
 0x154   : > { %v242_v22 = vmul.f32 0.6931472, %v492_v20 }
 0x156   : > { %v243_v24 = vadd.f32 %v242_v22, %v234_v5 }
 0x158   : > { %v255_v25 = vsub.f32 %v243_v24, %v254_v23 }
 0x15a   : > { %v264_v26 = vsel %vm263_vm2, %v255_v25, 0.0 }
 0x15b   : > { %v267_v27 = vsel %vm266_vm3, %v264_v26, 0.0 }
 0x15c   : > { %268 = vadd.xlane.f32.xlu1 %v267_v27 }
 0x1e5   : > { %v269_v28 = vpop.xlane.xlu1 %268 }
 0x1e6   : > { %v270_v29 = vrot.slane %v269_v28, 4 }
 0x1e8   : > { %v271_v30 = vadd.f32 %v270_v29, %v269_v28 }
 0x1ea   : > { %v272_v31 = vrot.slane %v271_v30, 2 }
 0x1ec   : > { %v273_v32 = vadd.f32 %v272_v31, %v271_v30 }
 0x1ee   : > { %v274_v33 = vrot.slane %v273_v32, 1 }
 0x1f0   : > { %v275_v34 = vadd.f32 %v274_v33, %v273_v32 }
 0x1f2   : > { %412 = vpush %v275_v34 }
 0x223   : > { %s413_s24 = spop %412  ;;  %283 = sbr.rel (%p407_p0) target bundleno = 562 (0x232), region = 36 }
 0x224   : > { %v277_v36 = vstv %s413_s24 }
 0x225   : > { %v278_v37 = vadd.f32 %v277_v36, %v265_v35 }
 0x227   : > { %279 = vst [vmem:[%s690_s18] sm:$0xff] %v278_v37 }
 0x22e   : > { %v284_v38 = vld [vmem:[%s690_s18] sm:$0xff] }
 0x22f   : > { %v286_v39 = vmul.f32 0.05, %v284_v38 }
 0x231   : > { %287 = vst [vmem:[%s690_s18] sm:$0xff] %v286_v39 }
 0x232 PF: > { %s409_s27 = sshll.u32 %s573_s13, 7  ;;  %s302_s3 = sshll.u32 %s690_s18, 4  ;;  %s303_s3 = int_to_ptr.vmem [resolvable:$true] %s302_s3 }
 0x233   : > { %s300_s30 = scalar_lea.hbm %s752_s2, %s409_s27  ;;  %s289_s12 = scalar_lea.sflag [#allocation3], %s197_s26 }
 0x234   : > { %s493_s4 = scalar_lea.vmem %s303_s3, 128  ;;  %s590_s5 = smov [#allocation2]  }
 0x235   : > { %p494_p1 = scmp.ne.s32.totalorder %s303_s3, %s493_s4  ;;  %s497_s6 = sshll.u32 %s590_s5, 4  ;;  %s498_s6 = int_to_ptr.vmem [resolvable:$false] %s497_s6 }
 0x236   : > { %s499_s7 = scalar_lea.vmem %s498_s6, 256  ;;  %p500_p5 = scmp.lt.s32.totalorder %s303_s3, %s498_s6 }
 0x237   : > { %p495_p2 = pnand %p494_p1, %p655_p3  ;;  %p501_p6 = scmp.lt.s32.totalorder %s499_s7, %s493_s4 }
 0x239   : > { %p496_p4 = pneg %p495_p2  ;;  %p502_p7 = por %p501_p6, %p500_p5 }
 0x23b   : > { %p503_p8 = pnand %p502_p7, %p496_p4 }
 0x23d   : > { %506 = shalt.err (!%p503_p8)
}
 0x23e   : > { %s507_s13 = scalar_lea.hbm %s300_s30, 128  ;;  %s511_s17 = scalar_lea.hbm %s752_s2, 256 }
 0x23f   : > { %p508_p10 = scmp.ne.s32.totalorder %s300_s30, %s507_s13  ;;  %p512_p13 = scmp.lt.s32.totalorder %s300_s30, %s752_s2 }
 0x240   : > { %p513_p0 = scmp.lt.s32.totalorder %s511_s17, %s507_s13 }
 0x241   : > { %p509_p11 = pnand %p508_p10, %p655_p3 }
 0x242   : > { %p514_p1 = por %p513_p0, %p512_p13 }
 0x243   : > { %p510_p12 = pneg %p509_p11 }
 0x245   : > { %p515_p2 = pnand %p514_p1, %p510_p12 }
 0x247   : > { %518 = shalt.err (!%p515_p2)
}
 0x248   : > { %414 = dma.vmem_to_hbm [thread:$0]  (%p655_p3), %s303_s3, 128, %s300_s30, %s289_s12  }
 0x249 PF: > { %p420_p4 = scmp.ge.s32.totalorder %s585_s16, 2  ;;  %s314_s24 = sand.u32 1, %s557_s9  }
 0x24a   : > { %s315_s27 = scalar_lea.sflag [#allocation3], %s314_s24 }
 0x24b   : > { %p417_p5 = pnand %p420_p4, %p665_p9 }
 0x24d   : > { %p418_p6 = pneg %p417_p5 }
 0x24f   : > { %552 = dma.done.wait (%p418_p6), %s315_s27, 128  }
 0x250   : > { %554 = vsyncadd (%p418_p6), %s315_s27, 4294967168  ;;  %s15_s16 = sadd.s32 1, %s585_s16   ;;  %s755_s9 = smov %s561_s10 }
 0x251   : > { %p12_p7 = scmp.ge.s32.totalorder %s15_s16, 6   ;;  %s756_s10 = smov %s565_s11 }
 0x252   : > { %s757_s11 = smov %s673_s25  ;;  %s758_s12 = smov %s577_s14 }
 0x253   : > { %s759_s13 = smov %s581_s15  ;;  %s760_s14 = smov %s763_s19 }
 0x254   : > { %s761_s15 = smov %s767_s20  ;;  %14 = sbr.rel (!%p12_p7) target bundleno = 5 (0x5), region = 74 }
 0x259   :  { %320 = vsyncpa [#allocation3], 1 }
 0x25a   :  { %322 = vsyncpa [#allocation3 + $0x1], 1 }

</bundles_post_ra>
